<compile_context>
chip_gen: v6e
topology: v6e:2x2x1
jax: 0.10.0
libtpu: 0.0.40
codegen_flags: <defaults>
</compile_context>

<pallas_src>
import functools

import jax
import jax.numpy as jnp
from jax.experimental import pallas as pl
from jax.experimental.pallas import tpu as pltpu


def _mlp_kernel(xT_ref, w1_ref, b1_ref, w2_ref, b2_ref, w3_ref, b3_ref, o_ref):
    xT = xT_ref[...]                                   # (2, tb)   f32, lane-dense
    w1 = w1_ref[...]                                   # (64, 2)   PyTorch (out, in) layout

    # ---- Layer 1: Linear(2, 64) + ReLU.  K=2 -> VPU broadcast mul-adds (skip MXU).
    h1 = w1[:, 0:1] * xT[0:1, :] + w1[:, 1:2] * xT[1:2, :] + b1_ref[...]   # (64, tb)
    h1 = jnp.maximum(h1, 0.0)

    # ---- Layer 2: Linear(64, 32) + ReLU.  (32,64)@(64,tb) on the MXU, f32 accumulate.
    h2 = jnp.dot(w2_ref[...], h1, preferred_element_type=jnp.float32) + b2_ref[...]
    h2 = jnp.maximum(h2, 0.0)                          # (32, tb)

    # ---- Layer 3: Linear(32, 1) + Sigmoid.  out=1 -> VPU mul + sublane reduce (XLU).
    z = jnp.sum(w3_ref[...] * h2, axis=0, keepdims=True) + b3_ref[...]      # (1, tb)
    o_ref[...] = jax.nn.sigmoid(z).astype(o_ref.dtype)


def _reference_forward(x, params):
    """Pure-JAX reference (and tiny-batch fast path)."""
    w1, b1, w2, b2, w3, b3 = params
    h1 = jnp.maximum(x @ w1.T + b1[:, 0], 0.0)
    h2 = jnp.maximum(h1 @ w2.T + b2[:, 0], 0.0)
    return jax.nn.sigmoid(h2 @ w3 + b3[0])


@functools.partial(jax.jit, static_argnames=("tb",))
def simple_net_forward(x, params, *, tb=512):
    """Fused MLP forward.  x: (B, 2) float32 -> (B, 1) float32."""
    w1, b1, w2, b2, w3, b3 = params
    B = x.shape[0]

    # Tiny batches: pallas_call fixed cost dwarfs the ~kFLOPs of work -> fused XLA HLO.
    if B < 128:
        return _reference_forward(x, params)

    # Batch-on-lanes: pad batch to a multiple of the lane tile and transpose to (2, Bp).
    n_blocks = pl.cdiv(B, tb)
    Bp = n_blocks * tb
    xT = jnp.zeros((2, Bp), x.dtype).at[:, :B].set(x.T)

    # Weights/biases: constant block index -> fetched once, VMEM-resident across steps.
    const = lambda shape: pl.BlockSpec(shape, lambda i: (0, 0))

    # TODO(synk): optionally sweep pipeline_mode=pl.Buffered(3) on the xT spec once
    # profiled; at tb>=512 the default depth-2 pipeline already hides the tiny DMA.
    outT = pl.pallas_call(
        _mlp_kernel,
        out_shape=jax.ShapeDtypeStruct((1, Bp), jnp.float32),
        grid_spec=pltpu.PrefetchScalarGridSpec(
            num_scalar_prefetch=0,
            grid=(n_blocks,),
            in_specs=[
                pl.BlockSpec((2, tb), lambda i: (0, i)),   # xT tile (lane-dense)
                const((64, 2)),  const((64, 1)),           # W1, b1
                const((32, 64)), const((32, 1)),           # W2, b2
                const((32, 1)),  const((1, 1)),            # W3 (stored as (in, out)), b3
            ],
            out_specs=pl.BlockSpec((1, tb), lambda i: (0, i)),  # lane-dense output
        ),
        compiler_params=pltpu.CompilerParams(
            dimension_semantics=("parallel",),   # batch tiles shard across TCs on v7x
        ),
    )(xT, w1, b1, w2, b2, w3, b3)

    return outT[:, :B].T   # back to (B, 1)


def init_params(key):
    """PyTorch-style Linear init (U(-1/sqrt(fan_in), +1/sqrt(fan_in)))."""
    def linear_init(k, fan_in, fan_out):
        kw, kb = jax.random.split(k)
        bound = 1.0 / jnp.sqrt(jnp.float32(fan_in))
        w = jax.random.uniform(kw, (fan_out, fan_in), jnp.float32, -bound, bound)
        b = jax.random.uniform(kb, (fan_out, 1), jnp.float32, -bound, bound)
        return w, b

    k1, k2, k3 = jax.random.split(key, 3)
    w1, b1 = linear_init(k1, 2, 64)          # (64, 2), (64, 1)
    w2, b2 = linear_init(k2, 64, 32)         # (32, 64), (32, 1)
    w3, b3 = linear_init(k3, 32, 1)          # (1, 32), (1, 1)
    return (w1, b1, w2, b2, w3.T, b3)        # store W3 transposed: (32, 1)


if __name__ == "__main__":
    key = jax.random.PRNGKey(0)
    kx, kp = jax.random.split(key)

    batch = 1024                              # 2 grid steps at tb=512 (feeds both v7x TCs)
    x = jax.random.normal(kx, (batch, 2), dtype=jnp.float32)
    params = init_params(kp)

    out = jax.block_until_ready(simple_net_forward(x, params, tb=512))
    ref = _reference_forward(x, params)

    assert out.shape == (batch, 1), out.shape
    assert jnp.allclose(out, ref, atol=1e-5, rtol=1e-5), "mismatch vs reference"

    print("KERNEL_OK")
</pallas_src>

<mosaic_0001>
module attributes {stable_mosaic.version = 11 : i64} {
  func.func @_mlp_kernel(%arg0: i32, %arg1: memref<2x512xf32, #tpu.memory_space<vmem>>, %arg2: memref<64x2xf32, #tpu.memory_space<vmem>>, %arg3: memref<64x1xf32, #tpu.memory_space<vmem>>, %arg4: memref<32x64xf32, #tpu.memory_space<vmem>>, %arg5: memref<32x1xf32, #tpu.memory_space<vmem>>, %arg6: memref<32x1xf32, #tpu.memory_space<vmem>>, %arg7: memref<1x1xf32, #tpu.memory_space<vmem>>, %arg8: memref<1x512xf32, #tpu.memory_space<vmem>>) attributes {dimension_semantics = [#tpu.dimension_semantics<parallel>], iteration_bounds = array<i64: 2>, scalar_prefetch = 0 : i64, scratch_operands = 0 : i64, tpu.core_type = #tpu.core_type<tc>, window_params = [{transform_indices = @transform_0, window_bounds = array<i64: 2, 512>}, {pipeline_mode = #tpu.pipeline_mode<synchronous>, transform_indices = @transform_1, window_bounds = array<i64: 64, 2>}, {pipeline_mode = #tpu.pipeline_mode<synchronous>, transform_indices = @transform_2, window_bounds = array<i64: 64, 1>}, {pipeline_mode = #tpu.pipeline_mode<synchronous>, transform_indices = @transform_3, window_bounds = array<i64: 32, 64>}, {pipeline_mode = #tpu.pipeline_mode<synchronous>, transform_indices = @transform_4, window_bounds = array<i64: 32, 1>}, {pipeline_mode = #tpu.pipeline_mode<synchronous>, transform_indices = @transform_5, window_bounds = array<i64: 32, 1>}, {pipeline_mode = #tpu.pipeline_mode<synchronous>, transform_indices = @transform_6, window_bounds = array<i64: 1, 1>}, {transform_indices = @transform_7, window_bounds = array<i64: 1, 512>}]} {
    %c0 = arith.constant 0 : index
    %c0_0 = arith.constant 0 : index
    %0 = vector.load %arg1[%c0, %c0_0] : memref<2x512xf32, #tpu.memory_space<vmem>>, vector<2x512xf32>
    %c0_1 = arith.constant 0 : index
    %c0_2 = arith.constant 0 : index
    %1 = vector.load %arg2[%c0_1, %c0_2] : memref<64x2xf32, #tpu.memory_space<vmem>>, vector<64x2xf32>
    %2 = vector.extract_strided_slice %1 {offsets = [0, 0], sizes = [64, 1], strides = [1, 1]} : vector<64x2xf32> to vector<64x1xf32>
    %3 = vector.extract_strided_slice %0 {offsets = [0, 0], sizes = [1, 512], strides = [1, 1]} : vector<2x512xf32> to vector<1x512xf32>
    %4 = vector.broadcast %2 : vector<64x1xf32> to vector<64x512xf32>
    %5 = vector.broadcast %3 : vector<1x512xf32> to vector<64x512xf32>
    %6 = arith.mulf %4, %5 : vector<64x512xf32>
    %7 = vector.extract_strided_slice %1 {offsets = [0, 1], sizes = [64, 1], strides = [1, 1]} : vector<64x2xf32> to vector<64x1xf32>
    %8 = vector.extract_strided_slice %0 {offsets = [1, 0], sizes = [1, 512], strides = [1, 1]} : vector<2x512xf32> to vector<1x512xf32>
    %9 = vector.broadcast %7 : vector<64x1xf32> to vector<64x512xf32>
    %10 = vector.broadcast %8 : vector<1x512xf32> to vector<64x512xf32>
    %11 = arith.mulf %9, %10 : vector<64x512xf32>
    %12 = arith.addf %6, %11 : vector<64x512xf32>
    %c0_3 = arith.constant 0 : index
    %c0_4 = arith.constant 0 : index
    %13 = vector.load %arg3[%c0_3, %c0_4] : memref<64x1xf32, #tpu.memory_space<vmem>>, vector<64x1xf32>
    %14 = vector.broadcast %13 : vector<64x1xf32> to vector<64x512xf32>
    %15 = arith.addf %12, %14 : vector<64x512xf32>
    %cst = arith.constant 0.000000e+00 : f32
    %16 = vector.broadcast %cst : f32 to vector<64x512xf32>
    %17 = arith.maximumf %15, %16 : vector<64x512xf32>
    %c0_5 = arith.constant 0 : index
    %c0_6 = arith.constant 0 : index
    %18 = vector.load %arg4[%c0_5, %c0_6] : memref<32x64xf32, #tpu.memory_space<vmem>>, vector<32x64xf32>
    %cst_7 = arith.constant dense<0.000000e+00> : vector<32x512xf32>
    %19 = tpu.matmul %18, %17, %cst_7 {dimension_numbers = #tpu.dot_dimension_numbers<[1], [0], [0], [1], [0, 0, 1, 1], [], []>} : vector<32x64xf32>, vector<64x512xf32>, vector<32x512xf32> -> vector<32x512xf32>
    %c0_8 = arith.constant 0 : index
    %c0_9 = arith.constant 0 : index
    %20 = vector.load %arg5[%c0_8, %c0_9] : memref<32x1xf32, #tpu.memory_space<vmem>>, vector<32x1xf32>
    %21 = vector.broadcast %20 : vector<32x1xf32> to vector<32x512xf32>
    %22 = arith.addf %19, %21 : vector<32x512xf32>
    %cst_10 = arith.constant 0.000000e+00 : f32
    %23 = vector.broadcast %cst_10 : f32 to vector<32x512xf32>
    %24 = arith.maximumf %22, %23 : vector<32x512xf32>
    %c0_11 = arith.constant 0 : index
    %c0_12 = arith.constant 0 : index
    %25 = vector.load %arg6[%c0_11, %c0_12] : memref<32x1xf32, #tpu.memory_space<vmem>>, vector<32x1xf32>
    %26 = vector.broadcast %25 : vector<32x1xf32> to vector<32x512xf32>
    %27 = arith.mulf %26, %24 : vector<32x512xf32>
    %cst_13 = arith.constant dense<0.000000e+00> : vector<512xf32>
    %28 = vector.multi_reduction <add>, %27, %cst_13 [0] : vector<32x512xf32> to vector<512xf32>
    %29 = vector.shape_cast %28 : vector<512xf32> to vector<1x512xf32>
    %c0_14 = arith.constant 0 : index
    %c0_15 = arith.constant 0 : index
    %30 = vector.load %arg7[%c0_14, %c0_15] : memref<1x1xf32, #tpu.memory_space<vmem>>, vector<1x1xf32>
    %31 = vector.broadcast %30 : vector<1x1xf32> to vector<1x512xf32>
    %32 = arith.addf %29, %31 : vector<1x512xf32>
    %33 = arith.negf %32 : vector<1x512xf32>
    %34 = math.exp %33 : vector<1x512xf32>
    %cst_16 = arith.constant 1.000000e+00 : f32
    %35 = vector.broadcast %cst_16 : f32 to vector<1x512xf32>
    %36 = arith.addf %35, %34 : vector<1x512xf32>
    %37 = arith.divf %35, %36 : vector<1x512xf32>
    %c0_17 = arith.constant 0 : index
    %c0_18 = arith.constant 0 : index
    %38 = vector.load %arg8[%c0_17, %c0_18] : memref<1x512xf32, #tpu.memory_space<vmem>>, vector<1x512xf32>
    tpu.vector_store %arg8[%c0_17, %c0_18], %37 {strides = array<i32>} : memref<1x512xf32, #tpu.memory_space<vmem>>, vector<1x512xf32>,
    return
  }
  func.func @transform_0(%arg0: i32) -> (i32, i32) {
    %c0_i32 = arith.constant 0 : i32
    %c0_i32_0 = arith.constant 0 : i32
    return %c0_i32, %arg0 : i32, i32
  }
  func.func @transform_1(%arg0: i32) -> (i32, i32) {
    %c0_i32 = arith.constant 0 : i32
    %c0_i32_0 = arith.constant 0 : i32
    %c0_i32_1 = arith.constant 0 : i32
    return %c0_i32, %c0_i32_0 : i32, i32
  }
  func.func @transform_2(%arg0: i32) -> (i32, i32) {
    %c0_i32 = arith.constant 0 : i32
    %c0_i32_0 = arith.constant 0 : i32
    %c0_i32_1 = arith.constant 0 : i32
    return %c0_i32, %c0_i32_0 : i32, i32
  }
  func.func @transform_3(%arg0: i32) -> (i32, i32) {
    %c0_i32 = arith.constant 0 : i32
    %c0_i32_0 = arith.constant 0 : i32
    %c0_i32_1 = arith.constant 0 : i32
    return %c0_i32, %c0_i32_0 : i32, i32
  }
  func.func @transform_4(%arg0: i32) -> (i32, i32) {
    %c0_i32 = arith.constant 0 : i32
    %c0_i32_0 = arith.constant 0 : i32
    %c0_i32_1 = arith.constant 0 : i32
    return %c0_i32, %c0_i32_0 : i32, i32
  }
  func.func @transform_5(%arg0: i32) -> (i32, i32) {
    %c0_i32 = arith.constant 0 : i32
    %c0_i32_0 = arith.constant 0 : i32
    %c0_i32_1 = arith.constant 0 : i32
    return %c0_i32, %c0_i32_0 : i32, i32
  }
  func.func @transform_6(%arg0: i32) -> (i32, i32) {
    %c0_i32 = arith.constant 0 : i32
    %c0_i32_0 = arith.constant 0 : i32
    %c0_i32_1 = arith.constant 0 : i32
    return %c0_i32, %c0_i32_0 : i32, i32
  }
  func.func @transform_7(%arg0: i32) -> (i32, i32) {
    %c0_i32 = arith.constant 0 : i32
    %c0_i32_0 = arith.constant 0 : i32
    return %c0_i32, %arg0 : i32, i32
  }
}

</mosaic_0001>

<bundles_post_ra>
// kernel: simple_net_forward.1
= control target key start
LH: loop header
LB: loop body
LE: loop exit
PB: predicated region body
PF: predicated region fallthrough
CT: control target
= control target key end

     0   :  { %s1623_s0 = inlined_call_operand.vmem [shape: f32[2,1024], index: 0, kind: input, shape index: {}]   ;;  %s1624_s1 = inlined_call_operand.vmem [shape: f32[64,2], index: 1, kind: input, shape index: {}]   ;;  %s1625_s2 = inlined_call_operand.vmem [shape: f32[64,1], index: 2, kind: input, shape index: {}]   ;;  %s1626_s3 = inlined_call_operand.vmem [shape: f32[32,64], index: 3, kind: input, shape index: {}]   ;;  %s1627_s4 = inlined_call_operand.vmem [shape: f32[32,1], index: 4, kind: input, shape index: {}]   ;;  %s1628_s5 = inlined_call_operand.vmem [shape: f32[32,1], index: 5, kind: input, shape index: {}]   ;;  %s1629_s6 = inlined_call_operand.<no memory space> [shape: f32[1,1], index: 6, kind: input, shape index: {}]   ;;  %s1630_s7 = inlined_call_operand.hbm [shape: f32[1,1024], index: 7, kind: output, shape index: {}]  }
   0x1   :  { %v12_v0 = vstv %s1629_s6 }
   0x2   :  { %13 = vst [vmem:[#allocation2] sm:$0x1] %v12_v0 }
   0x3   :  { %14 = vsyncpa [#allocation4], 0 }
   0x4   :  { %16 = vsyncpa [#allocation4 + $0x1], 0  ;;  %s1306_s26 = smov 0   ;;  %s1308_s27 = smov 0  }
   0x5   :  { %s1310_s28 = smov 0   ;;  %s1312_s29 = smov 0  }
   0x6 LB: > { %s1327_s6 = sadd.s32 4294967295, %s1256_s29   ;;  %s1101_s30 = sadd.s32 4294967294, %s1256_s29   ;;  %s1256_s29 = sphi %s1312_s29, %s1636_s29   ;;  %s1252_s28 = sphi %s1310_s28, %s1635_s28   ;;  %s1248_s27 = sphi %s1308_s27, %s1634_s27   ;;  %s1244_s26 = sphi %s1306_s26, %s1633_s26  }
   0x7   : > { %s1331_s8 = sadd.s32 1, %s1256_s29   ;;  %s181_s9 = sadd.s32 1, %s1252_s28 }
   0x8   : > { %s178_s10 = ssub.s32 %s1256_s29, %s1331_s8  ;;  %p191_p0 = scmp.ne.s32.totalorder %s1252_s28, %s1248_s27 }
   0x9   : > { %p179_p1 = scmp.eq.s32.totalorder %s178_s10, 0  ;;  %p192_p2 = scmp.eq.s32.totalorder %s1327_s6, 1 }
   0xa   : > { %p197_p3 = scmp.ne.s32.totalorder %s1248_s27, %s1244_s26  ;;  %p198_p4 = scmp.eq.s32.totalorder %s1101_s30, 1 }
   0xb   : > { %s1342_s11 = scalar_select %p179_p1, %s1252_s28, %s181_s9  }
   0xc   : > { %p1344_p5 = por %p192_p2, %p191_p0  ;;  %p1348_p6 = por %p198_p4, %p197_p3 }
   0xd   : > { %p1104_p7 = scmp.ge.s32.totalorder %s1256_s29, 1  ;;  %p243_p8 = scmp.lt.s32.totalorder %s1256_s29, 3 }
   0xf   : > { %p244_p9 = pnand %p1104_p7, %p243_p8 }
  0x10   : > { %s1106_s17 = sshll.u32 (!%p244_p9), %s1327_s6, 2  ;;  %s272_s15 = sand.u32 (!%p244_p9), 1, %s1248_s27  }
  0x11   : > { %247 = sbr.rel (%p244_p9) target bundleno = 498 (0x1f2), region = 48  ;;  %p276_p10 = scmp.lt.s32.totalorder (!%p244_p9), %s1106_s17, 7 }
  0x12   : > { %s1105_s16 = sshll.u32 (!%p244_p9), %s272_s15, 2  ;;  %s1028_s23 = scalar_lea.sflag (!%p244_p9), [#allocation4], %s272_s15 }
  0x13   : > { %s1262_s25 = smov (!%p244_p9), [#allocation3]  }
  0x16   : > { %v290_v1 = vld [vmem:[%s1624_s1 + $0x38] sm:$0xff]  ;;  %v289_v2 = vld [vmem:[%s1624_s1 + $0x30] sm:$0xff]  ;;  %v1258_v3 = vmov 1   ;;  %v1259_v4 = vmov 0   ;;  %v288_v5 = vld [vmem:[%s1624_s1 + $0x28] sm:$0xff]  ;;  %v1260_v25 = vmov 0.0   ;;  %v332_v29 = vlaneseq }
  0x17   : > { %1169 = vset.pattern.permute.xlu0 %v1258_v3  ;;  %1170 = vset.pattern.permute.xlu1 %v1259_v4  ;;  %v285_v6 = vld [vmem:[%s1624_s1 + $0x10] sm:$0xff]  ;;  %v284_v7 = vld [vmem:[%s1624_s1 + $0x8] sm:$0xff]  ;;  %v539_v8 = vld [vmem:[%s1625_s2 + $0x38] sm:$0xff]  ;;  %s1638_s17 = smov (!%p276_p10, %s1106_s17), 7  ;;  %vm672_vm0 = vcmask 523264  }
  0x18   : > { %429 = vperm.xlu0 %1169, %v290_v1   ;;  %323 = vperm.xlu1 %1170, %v289_v2   ;;  %v287_v9 = vld [vmem:[%s1624_s1 + $0x20] sm:$0xff]  ;;  %v538_v10 = vld [vmem:[%s1625_s2 + $0x30] sm:$0xff]  ;;  %v286_v11 = vld [vmem:[%s1624_s1 + $0x18] sm:$0xff]  ;;  %s1107_s18 = sshll.u32 %s1638_s17, 1  ;;  %v1430_v32 = vshrl.u32 %v332_v29, 7  ;;  %s1125_s17 = sshll.u32 %s1327_s6, 6 }
  0x19   : > { %v537_v12 = vld [vmem:[%s1625_s2 + $0x28] sm:$0xff]  ;;  %v283_v13 = vld [vmem:[%s1624_s1] sm:$0xff]  ;;  %v650_v17 = vld [vmem:[%s1627_s4 + $0x10] sm:$0xff]  ;;  %749 = vmatprep.mubr.f32.mxu0 %v1260_v25  ;;  %838 = vmatprep.mubr.f32.mxu1 %v1260_v25  ;;  %s279_s21 = scalar_lea.vmem %s1623_s0, %s1107_s18  ;;  %s274_s18 = scalar_lea.vmem [#allocation3], %s1105_s16  ;;  %vm1024_vm1 = vcmp.lt.s32.totalorder %v332_v29, 512 }
  0x1a   : > { %v533_v14 = vld [vmem:[%s1625_s2 + $0x8] sm:$0xff]  ;;  %v536_v15 = vld [vmem:[%s1625_s2 + $0x20] sm:$0xff]  ;;  %v535_v18 = vld [vmem:[%s1625_s2 + $0x18] sm:$0xff]  ;;  %v438_v34 = vsub.s32 3, %v1430_v32  ;;  %v446_v35 = vsub.s32 7, %v1430_v32  ;;  %v434_v37 = vsub.s32 1, %v1430_v32  ;;  %s1040_s22 = scalar_lea.hbm %s1630_s7, %s1125_s17 }
  0x1b   : > { %v648_v16 = vld [vmem:[%s1627_s4] sm:$0xff]  ;;  %v881_v20 = vld [vmem:[%s1628_s5 + $0x10] sm:$0xff]  ;;  %v649_v24 = vld [vmem:[%s1627_s4 + $0x8] sm:$0xff]  ;;  %v442_v38 = vsub.s32 5, %v1430_v32  ;;  %v1442_v39 = vsub.s32 0, %v1430_v32  ;;  %v338_v40 = vsub.s32 2, %v1430_v32 }
  0x1c   : > { %1171 = vset.pattern.permute.xlu1 %v1258_v3  ;;  %421 = vperm.xlu0 %1169, %v288_v5   ;;  %v879_v19 = vld [vmem:[%s1628_s5] sm:$0xff]  ;;  %v534_v21 = vld [vmem:[%s1625_s2 + $0x10] sm:$0xff]  ;;  %v651_v26 = vld [vmem:[%s1627_s4 + $0x18] sm:$0xff]  ;;  %v342_v41 = vsub.s32 4, %v1430_v32  ;;  %v346_v42 = vsub.s32 6, %v1430_v32  ;;  %s1042_s19 = sshll.u32 %s274_s18, 4  ;;  %s1043_s19 = int_to_ptr.vmem [resolvable:$true] %s1042_s19 }
  0x1d   : > { %425 = vperm.xlu1 %1171, %v289_v2   ;;  %v955_v22 = vld [vmem:[#allocation2] sm:$0x1]  ;;  %v880_v27 = vld [vmem:[%s1628_s5 + $0x8] sm:$0xff]  ;;  %v882_v28 = vld [vmem:[%s1628_s5 + $0x18] sm:$0xff]  ;;  %s1196_s24 = scalar_lea.vmem %s1043_s19, 64  ;;  %s1200_s6 = sshll.u32 %s1262_s25, 4  ;;  %s1201_s6 = int_to_ptr.vmem [resolvable:$false] %s1200_s6 }
  0x1e   : > { %v532_v23 = vld [vmem:[%s1625_s2] sm:$0xff]  ;;  %p1197_p11 = scmp.ne.s32.totalorder %s1043_s19, %s1196_s24  ;;  %s1202_s30 = scalar_lea.vmem %s1201_s6, 128 }
  0x1f   : > { %v282_v43 = vld [vmem:[%s279_s21] sm:$0xff]  ;;  %p1203_p0 = scmp.lt.s32.totalorder %s1043_s19, %s1201_s6  ;;  %p1204_p1 = scmp.lt.s32.totalorder %s1202_s30, %s1196_s24 }
  0x20   : > { %409 = vperm.xlu0 %1169, %v285_v6   ;;  %v439_v45 = vrot.slane %v282_v43, %v438_v34  ;;  %v447_v46 = vrot.slane %v282_v43, %v446_v35  ;;  %v435_v47 = vrot.slane %v282_v43, %v434_v37  ;;  %v443_v48 = vrot.slane %v282_v43, %v442_v38  ;;  %p1198_p12 = pnand %p1197_p11, %p1344_p5 }
  0x21   : > { %1172 = vset.pattern.permute.xlu1 %v1259_v4  ;;  %v335_v50 = vrot.slane %v282_v43, %v1442_v39  ;;  %v339_v51 = vrot.slane %v282_v43, %v338_v40  ;;  %v343_v52 = vrot.slane %v282_v43, %v342_v41  ;;  %v347_v53 = vrot.slane %v282_v43, %v346_v42  ;;  %p1205_p2 = por %p1204_p1, %p1203_p0 }
  0x22   : > { %318 = vperm.xlu1 %1172, %v288_v5   ;;  %v1452_v55 = vrot.slane %v439_v45, %v434_v37  ;;  %v1454_v56 = vrot.slane %v447_v46, %v434_v37  ;;  %v1456_v57 = vrot.slane %v435_v47, %v434_v37  ;;  %v1458_v58 = vrot.slane %v443_v48, %v434_v37  ;;  %p1199_p13 = pneg %p1198_p12 }
  0x23   : > { %v1461_v60 = vrot.slane %v335_v50, %v1442_v39  ;;  %v1464_v61 = vrot.slane %v339_v51, %v1442_v39  ;;  %v1467_v62 = vrot.slane %v343_v52, %v1442_v39  ;;  %v1470_v63 = vrot.slane %v347_v53, %v1442_v39 }
  0x24   : > { %405 = vperm.xlu0 %1169, %v284_v7   ;;  %p1206_p3 = pnand %p1205_p2, %p1199_p13 }
  0x26   : > { %577 = vperm.xlu1 %1172, %v539_v8  }
  0x28   : > { %1177 = vset.pattern.permute.xlu0 %v1259_v4 }
  0x29   : > { %328 = vperm.xlu0 %1177, %v290_v1  }
  0x2a   : > { %1173 = vset.pattern.permute.xlu1 %v1258_v3 }
  0x2b   : > { %417 = vperm.xlu1 %1173, %v287_v9  }
  0x2d   : > { %313 = vperm.xlu0 %1177, %v287_v9  }
  0x2f   : > { %1174 = vset.pattern.permute.xlu1 %v1259_v4 }
  0x30   : > { %572 = vperm.xlu1 %1174, %v538_v10  }
  0x31   : > { %308 = vperm.xlu0 %1177, %v286_v11  }
  0x34   : > { %1175 = vset.pattern.permute.xlu1 %v1258_v3 }
  0x35   : > { %413 = vperm.xlu1 %1175, %v286_v11   ;;  %567 = vperm.xlu0 %1177, %v537_v12  }
  0x39   : > { %1176 = vset.pattern.permute.xlu1 %v1259_v4  ;;  %293 = vperm.xlu0 %1177, %v283_v13  }
  0x3a   : > { %303 = vperm.xlu1 %1176, %v285_v6  }
  0x3d   : > { %547 = vperm.xlu0 %1177, %v533_v14  }
  0x3e   : > { %562 = vperm.xlu1 %1176, %v536_v15  }
  0x41   : > { %654 = vperm.xlu0 %1177, %v648_v16  }
  0x42   : > { %298 = vperm.xlu1 %1176, %v284_v7  }
  0x45   : > { %664 = vperm.xlu0 %1177, %v650_v17  }
  0x46   : > { %557 = vperm.xlu1 %1176, %v535_v18  }
  0x49   : > { %885 = vperm.xlu0 %1177, %v879_v19  }
  0x4a   : > { %1178 = vset.pattern.permute.xlu1 %v1258_v3 }
  0x4b   : > { %401 = vperm.xlu1 %1178, %v283_v13  }
  0x4d   : > { %895 = vperm.xlu0 %1177, %v881_v20  }
  0x4f   : > { %1179 = vset.pattern.permute.xlu1 %v1259_v4 }
  0x50   : > { %552 = vperm.xlu1 %1179, %v534_v21  }
  0x51   : > { %958 = vperm.xlu0 %1177, %v955_v22  }
  0x54   : > { %542 = vperm.xlu1 %1179, %v532_v23  }
  0x58   : > { %659 = vperm.xlu1 %1179, %v649_v24  }
  0x5c   : > { %669 = vperm.xlu1 %1179, %v651_v26  }
  0x60   : > { %890 = vperm.xlu1 %1179, %v880_v27  }
  0x64   : > { %900 = vperm.xlu1 %1179, %v882_v28  }
  0x93   : > { %v324_v30 = vpop.permute.xlu1 %323  ;;  %v430_v31 = vpop.permute.xlu0 %429 }
  0x94   : > { %v496_v0 = vmul.f32 %v1456_v57, %v430_v31  ;;  %v498_v1 = vmul.f32 %v1458_v58, %v430_v31  ;;  %v497_v5 = vmul.f32 %v1452_v55, %v430_v31  ;;  %v499_v6 = vmul.f32 %v1454_v56, %v430_v31 }
  0x95   : > { %v392_v11 = vmul.f32 %v1461_v60, %v324_v30  ;;  %v393_v12 = vmul.f32 %v1464_v61, %v324_v30  ;;  %v394_v13 = vmul.f32 %v1467_v62, %v324_v30  ;;  %v395_v15 = vmul.f32 %v1470_v63, %v324_v30 }
  0x97   : > { %v1432_v33 = vpop.permute.xlu0 %421 }
  0x98   : > { %v426_v36 = vpop.permute.xlu1 %425  ;;  %v488_v17 = vmul.f32 %v1456_v57, %v1432_v33  ;;  %v489_v18 = vmul.f32 %v1452_v55, %v1432_v33  ;;  %v491_v26 = vmul.f32 %v1454_v56, %v1432_v33  ;;  %v490_v48 = vmul.f32 %v1458_v58, %v1432_v33 }
  0x99   : > { %v493_v2 = vmul.f32 %v1452_v55, %v426_v36  ;;  %v495_v3 = vmul.f32 %v1454_v56, %v426_v36  ;;  %v492_v16 = vmul.f32 %v1456_v57, %v426_v36  ;;  %v494_v24 = vmul.f32 %v1458_v58, %v426_v36 }
  0x9b   : > { %v1447_v44 = vpop.permute.xlu0 %409  ;;  %v525_v27 = vadd.f32 %v493_v2, %v393_v12  ;;  %v527_v28 = vadd.f32 %v495_v3, %v395_v15  ;;  %v524_v42 = vadd.f32 %v492_v16, %v392_v11  ;;  %v526_v51 = vadd.f32 %v494_v24, %v394_v13 }
  0x9d   : > { %v319_v49 = vpop.permute.xlu1 %318 }
  0x9e   : > { %v388_v37 = vmul.f32 %v1461_v60, %v319_v49  ;;  %v389_v38 = vmul.f32 %v1464_v61, %v319_v49  ;;  %v391_v40 = vmul.f32 %v1470_v63, %v319_v49  ;;  %v390_v50 = vmul.f32 %v1467_v62, %v319_v49 }
  0x9f   : > { %v1450_v54 = vpop.permute.xlu0 %405 }
  0xa0   : > { %v523_v2 = vadd.f32 %v491_v26, %v391_v40  ;;  %v522_v33 = vadd.f32 %v490_v48, %v390_v50 }
  0xa1   : > { %v578_v59 = vpop.permute.xlu1 %577 }
  0xa4   : > { %v329_v4 = vpop.permute.xlu0 %328 }
  0xa5   : > { %v396_v7 = vmul.f32 %v1461_v60, %v329_v4  ;;  %v398_v8 = vmul.f32 %v1467_v62, %v329_v4  ;;  %v397_v9 = vmul.f32 %v1464_v61, %v329_v4  ;;  %v399_v10 = vmul.f32 %v1470_v63, %v329_v4 }
  0xa6   : > { %v1485_v14 = vpop.permute.xlu1 %417 }
  0xa7   : > { %v529_v20 = vadd.f32 %v497_v5, %v397_v9  ;;  %v531_v21 = vadd.f32 %v499_v6, %v399_v10  ;;  %v528_v22 = vadd.f32 %v496_v0, %v396_v7  ;;  %v530_v23 = vadd.f32 %v498_v1, %v398_v8 }
  0xa8   : > { %v314_v19 = vpop.permute.xlu0 %313  ;;  %v521_v1 = vadd.f32 %v489_v18, %v389_v38  ;;  %v520_v8 = vadd.f32 %v488_v17, %v388_v37  ;;  %v485_v24 = vmul.f32 %v1452_v55, %v1485_v14  ;;  %v486_v26 = vmul.f32 %v1458_v58, %v1485_v14 }
  0xa9   : > { %v609_v30 = vadd.f32 %v578_v59, %v529_v20  ;;  %v611_v31 = vadd.f32 %v578_v59, %v531_v21  ;;  %v608_v34 = vadd.f32 %v578_v59, %v528_v22  ;;  %v610_v35 = vadd.f32 %v578_v59, %v530_v23 }
  0xaa   : > { %v384_v12 = vmul.f32 %v1461_v60, %v314_v19  ;;  %v385_v13 = vmul.f32 %v1464_v61, %v314_v19  ;;  %v386_v15 = vmul.f32 %v1467_v62, %v314_v19  ;;  %v387_v18 = vmul.f32 %v1470_v63, %v314_v19 }
  0xab   : > { %v573_v41 = vpop.permute.xlu1 %572  ;;  %v641_v45 = vmax.f32 %v609_v30, 0.0  ;;  %v643_v36 = vmax.f32 %v611_v31, 0.0  ;;  %v640_v46 = vmax.f32 %v608_v34, 0.0  ;;  %v642_v47 = vmax.f32 %v610_v35, 0.0 }
  0xac   : > { %v309_v43 = vpop.permute.xlu0 %308  ;;  %v605_v52 = vadd.f32 %v573_v41, %v525_v27  ;;  %v607_v53 = vadd.f32 %v573_v41, %v527_v28  ;;  %v604_v59 = vadd.f32 %v573_v41, %v524_v42  ;;  %v606_v0 = vadd.f32 %v573_v41, %v526_v51 }
  0xad   : > { %701 = vmatprep.subr.mxu0 %v641_v45  ;;  %790 = vmatprep.subr.mxu1 %v643_v36  ;;  %v484_v23 = vmul.f32 %v1456_v57, %v1485_v14  ;;  %v487_v27 = vmul.f32 %v1454_v56, %v1485_v14  ;;  %v517_v28 = vadd.f32 %v485_v24, %v385_v13 }
  0xae   : > { %702 = vmatpush1.msra.mxu0 %v640_v46  ;;  %791 = vmatpush1.msra.mxu1 %v642_v47  ;;  %v637_v5 = vmax.f32 %v605_v52, 0.0  ;;  %v639_v6 = vmax.f32 %v607_v53, 0.0  ;;  %v636_v7 = vmax.f32 %v604_v59, 0.0  ;;  %v638_v49 = vmax.f32 %v606_v0, 0.0 }
  0xaf   : > { %v519_v30 = vadd.f32 %v487_v27, %v387_v18  ;;  %v516_v31 = vadd.f32 %v484_v23, %v384_v12  ;;  %v518_v34 = vadd.f32 %v486_v26, %v386_v15  ;;  %v380_v35 = vmul.f32 %v1461_v60, %v309_v43 }
  0xb0   : > { %v414_v3 = vpop.permute.xlu1 %413  ;;  %v568_v4 = vpop.permute.xlu0 %567  ;;  %703 = vmatprep.subr.mxu0 %v637_v5  ;;  %792 = vmatprep.subr.mxu1 %v639_v6  ;;  %v381_v37 = vmul.f32 %v1464_v61, %v309_v43  ;;  %v382_v38 = vmul.f32 %v1467_v62, %v309_v43  ;;  %v383_v40 = vmul.f32 %v1470_v63, %v309_v43 }
  0xb1   : > { %v601_v9 = vadd.f32 %v568_v4, %v521_v1  ;;  %v603_v10 = vadd.f32 %v568_v4, %v523_v2  ;;  %v600_v11 = vadd.f32 %v568_v4, %v520_v8  ;;  %704 = vmatpush1.msra.mxu0 %v636_v7  ;;  %v602_v16 = vadd.f32 %v568_v4, %v522_v33 }
  0xb2   : > { %793 = vmatpush1.msra.mxu1 %v638_v49  ;;  %v480_v46 = vmul.f32 %v1456_v57, %v414_v3  ;;  %v481_v47 = vmul.f32 %v1452_v55, %v414_v3  ;;  %v482_v48 = vmul.f32 %v1458_v58, %v414_v3  ;;  %v483_v50 = vmul.f32 %v1454_v56, %v414_v3 }
  0xb3   : > { %v633_v20 = vmax.f32 %v601_v9, 0.0  ;;  %v635_v17 = vmax.f32 %v603_v10, 0.0  ;;  %v632_v21 = vmax.f32 %v600_v11, 0.0  ;;  %v634_v19 = vmax.f32 %v602_v16, 0.0 }
  0xb4   : > { %v513_v43 = vadd.f32 %v481_v47, %v381_v37  ;;  %v515_v1 = vadd.f32 %v483_v50, %v383_v40  ;;  %v512_v2 = vadd.f32 %v480_v46, %v380_v35  ;;  %v514_v4 = vadd.f32 %v482_v48, %v382_v38  ;;  %v294_v16 = vpop.permute.xlu0 %293 }
  0xb5   : > { %v1506_v22 = vpop.permute.xlu1 %303  ;;  %705 = vmatprep.subr.mxu0 %v633_v20  ;;  %794 = vmatprep.subr.mxu1 %v635_v17  ;;  %v476_v5 = vmul.f32 %v1456_v57, %v1447_v44  ;;  %v477_v6 = vmul.f32 %v1452_v55, %v1447_v44  ;;  %v478_v3 = vmul.f32 %v1458_v58, %v1447_v44 }
  0xb6   : > { %706 = vmatpush1.msra.mxu0 %v632_v21  ;;  %795 = vmatpush1.msra.mxu1 %v634_v19  ;;  %v479_v7 = vmul.f32 %v1454_v56, %v1447_v44  ;;  %v472_v11 = vmul.f32 %v1456_v57, %v1450_v54  ;;  %v473_v44 = vmul.f32 %v1452_v55, %v1450_v54 }
  0xb7   : > { %v475_v23 = vmul.f32 %v1454_v56, %v1450_v54  ;;  %v376_v24 = vmul.f32 %v1461_v60, %v1506_v22  ;;  %v377_v27 = vmul.f32 %v1464_v61, %v1506_v22  ;;  %v378_v19 = vmul.f32 %v1467_v62, %v1506_v22 }
  0xb8   : > { %v368_v38 = vmul.f32 %v1461_v60, %v294_v16  ;;  %v369_v40 = vmul.f32 %v1464_v61, %v294_v16 }
  0xb9   : > { %v563_v41 = vpop.permute.xlu1 %562  ;;  %v509_v46 = vadd.f32 %v477_v6, %v377_v27  ;;  %v508_v48 = vadd.f32 %v476_v5, %v376_v24  ;;  %v510_v50 = vadd.f32 %v478_v3, %v378_v19 }
  0xba   : > { %v597_v42 = vadd.f32 %v563_v41, %v517_v28  ;;  %v599_v14 = vadd.f32 %v563_v41, %v519_v30  ;;  %v596_v45 = vadd.f32 %v563_v41, %v516_v31  ;;  %v598_v36 = vadd.f32 %v563_v41, %v518_v34 }
  0xbb   : > { %v379_v28 = vmul.f32 %v1470_v63, %v1506_v22  ;;  %v474_v31 = vmul.f32 %v1458_v58, %v1450_v54  ;;  %v370_v41 = vmul.f32 %v1467_v62, %v294_v16 }
  0xbc   : > { %v629_v51 = vmax.f32 %v597_v42, 0.0  ;;  %v631_v52 = vmax.f32 %v599_v14, 0.0  ;;  %v628_v53 = vmax.f32 %v596_v45, 0.0  ;;  %v630_v59 = vmax.f32 %v598_v36, 0.0  ;;  %v548_v36 = vpop.permute.xlu0 %547 }
  0xbd   : > { %v299_v0 = vpop.permute.xlu1 %298  ;;  %v371_v42 = vmul.f32 %v1470_v63, %v294_v16  ;;  %v511_v47 = vadd.f32 %v479_v7, %v379_v28 }
  0xbe   : > { %707 = vmatprep.subr.mxu0 %v629_v51  ;;  %796 = vmatprep.subr.mxu1 %v631_v52  ;;  %v372_v12 = vmul.f32 %v1461_v60, %v299_v0  ;;  %v373_v13 = vmul.f32 %v1464_v61, %v299_v0  ;;  %v375_v15 = vmul.f32 %v1470_v63, %v299_v0 }
  0xbf   : > { %708 = vmatpush1.msra.mxu0 %v628_v53  ;;  %797 = vmatpush1.msra.mxu1 %v630_v59  ;;  %v374_v26 = vmul.f32 %v1467_v62, %v299_v0 }
  0xc0   : > { %v505_v34 = vadd.f32 %v473_v44, %v373_v13  ;;  %v507_v35 = vadd.f32 %v475_v23, %v375_v15  ;;  %v504_v37 = vadd.f32 %v472_v11, %v372_v12  ;;  %v655_v44 = vpop.permute.xlu0 %654 }
  0xc1   : > { %v558_v8 = vpop.permute.xlu1 %557  ;;  %v506_v54 = vadd.f32 %v474_v31, %v374_v26 }
  0xc2   : > { %v593_v33 = vadd.f32 %v558_v8, %v513_v43  ;;  %v595_v49 = vadd.f32 %v558_v8, %v515_v1  ;;  %v592_v9 = vadd.f32 %v558_v8, %v512_v2  ;;  %v594_v10 = vadd.f32 %v558_v8, %v514_v4 }
  0xc3   : > { %v585_v51 = vadd.f32 %v548_v36, %v505_v34  ;;  %v587_v62 = vadd.f32 %v548_v36, %v507_v35  ;;  %v584_v52 = vadd.f32 %v548_v36, %v504_v37  ;;  %v586_v0 = vadd.f32 %v548_v36, %v506_v54 }
  0xc4   : > { %v625_v18 = vmax.f32 %v593_v33, 0.0  ;;  %v627_v20 = vmax.f32 %v595_v49, 0.0  ;;  %v624_v17 = vmax.f32 %v592_v9, 0.0  ;;  %v626_v21 = vmax.f32 %v594_v10, 0.0  ;;  %v665_v24 = vpop.permute.xlu0 %664 }
  0xc5   : > { %v617_v3 = vmax.f32 %v585_v51, 0.0  ;;  %v616_v9 = vmax.f32 %v584_v52, 0.0  ;;  %v618_v10 = vmax.f32 %v586_v0, 0.0 }
  0xc6   : > { %v402_v30 = vpop.permute.xlu1 %401  ;;  %709 = vmatprep.subr.mxu0 %v625_v18  ;;  %798 = vmatprep.subr.mxu1 %v627_v20  ;;  %v644_v18 = vld [vmem:[%s1626_s3] sm:$0xff]  ;;  %v645_v20 = vld [vmem:[%s1626_s3 + $0x8] sm:$0xff] }
  0xc7   : > { %710 = vmatpush1.msra.mxu0 %v624_v17  ;;  %799 = vmatpush1.msra.mxu1 %v626_v21  ;;  %v468_v22 = vmul.f32 %v1456_v57, %v402_v30  ;;  %v469_v14 = vmul.f32 %v1452_v55, %v402_v30  ;;  %v471_v45 = vmul.f32 %v1454_v56, %v402_v30  ;;  %v646_v17 = vld [vmem:[%s1626_s3 + $0x10] sm:$0xff]  ;;  %v647_v21 = vld [vmem:[%s1626_s3 + $0x18] sm:$0xff] }
  0xc8   : > { %v470_v60 = vmul.f32 %v1458_v58, %v402_v30  ;;  %v619_v58 = vmax.f32 %v587_v62, 0.0 }
  0xc9   : > { %v501_v55 = vadd.f32 %v469_v14, %v369_v40  ;;  %v503_v43 = vadd.f32 %v471_v45, %v371_v42  ;;  %v500_v56 = vadd.f32 %v468_v22, %v368_v38  ;;  %v886_v40 = vpop.permute.xlu0 %885 }
  0xca   : > { %v502_v7 = vadd.f32 %v470_v60, %v370_v41 }
  0xcb   : > { %v553_v61 = vpop.permute.xlu1 %552 }
  0xcc   : > { %v589_v63 = vadd.f32 %v553_v61, %v509_v46  ;;  %v591_v53 = vadd.f32 %v553_v61, %v511_v47  ;;  %v588_v59 = vadd.f32 %v553_v61, %v508_v48  ;;  %v590_v57 = vadd.f32 %v553_v61, %v510_v50 }
  0xce   : > { %v621_v1 = vmax.f32 %v589_v63, 0.0  ;;  %v623_v2 = vmax.f32 %v591_v53, 0.0  ;;  %v620_v4 = vmax.f32 %v588_v59, 0.0  ;;  %v622_v6 = vmax.f32 %v590_v57, 0.0 }
  0xcf   : > { %v543_v5 = vpop.permute.xlu1 %542 }
  0xd0   : > { %711 = vmatprep.subr.mxu0 %v621_v1  ;;  %800 = vmatprep.subr.mxu1 %v623_v2  ;;  %v581_v8 = vadd.f32 %v543_v5, %v501_v55  ;;  %v583_v33 = vadd.f32 %v543_v5, %v503_v43  ;;  %v580_v49 = vadd.f32 %v543_v5, %v500_v56  ;;  %v896_v56 = vpop.permute.xlu0 %895 }
  0xd1   : > { %712 = vmatpush1.msra.mxu0 %v620_v4  ;;  %801 = vmatpush1.msra.mxu1 %v622_v6  ;;  %v582_v11 = vadd.f32 %v543_v5, %v502_v7 }
  0xd2   : > { %713 = vmatprep.subr.mxu0 %v617_v3  ;;  %802 = vmatprep.subr.mxu1 %v619_v58  ;;  %v613_v12 = vmax.f32 %v581_v8, 0.0  ;;  %v615_v13 = vmax.f32 %v583_v33, 0.0  ;;  %v612_v15 = vmax.f32 %v580_v49, 0.0 }
  0xd3   : > { %714 = vmatpush1.msra.mxu0 %v616_v9  ;;  %803 = vmatpush1.msra.mxu1 %v618_v10  ;;  %v614_v16 = vmax.f32 %v582_v11, 0.0  ;;  %v660_v23 = vpop.permute.xlu1 %659 }
  0xd4   : > { %715 = vmatprep.subr.mxu0 %v613_v12  ;;  %804 = vmatprep.subr.mxu1 %v615_v13 }
  0xd5   : > { %716 = vmatpush1.msra.mxu0 %v612_v15  ;;  %805 = vmatpush1.msra.mxu1 %v614_v16 }
  0xd6   : > { %1108 = vmatmul.mubr.msk.f32.vlgmr.msra.gmra.mxu0 %vm672_vm0, %v644_v18  ;;  %1112 = vmatmul.mubr.msk.f32.vlgmr.msra.gmra.mxu1 %vm672_vm0, %v644_v18 }
  0xd7   : > { %755 = vmatprep.mubr.f32.mxu0 %v1260_v25  ;;  %844 = vmatprep.mubr.f32.mxu1 %v1260_v25  ;;  %v670_v34 = vpop.permute.xlu1 %669 }
  0xda   : > { %1109 = vmatmul.mubr.msk.f32.gmra.mxu0 %vm672_vm0, %v645_v20  ;;  %1113 = vmatmul.mubr.msk.f32.gmra.mxu1 %vm672_vm0, %v645_v20 }
  0xdb   : > { %761 = vmatprep.mubr.f32.mxu0 %v1260_v25  ;;  %850 = vmatprep.mubr.f32.mxu1 %v1260_v25  ;;  %v891_v62 = vpop.permute.xlu1 %890 }
  0xde   : > { %1110 = vmatmul.mubr.msk.f32.gmra.mxu0 %vm672_vm0, %v646_v17  ;;  %1114 = vmatmul.mubr.msk.f32.gmra.mxu1 %vm672_vm0, %v646_v17 }
  0xdf   : > { %767 = vmatprep.mubr.f32.mxu0 %v1260_v25  ;;  %856 = vmatprep.mubr.f32.mxu1 %v1260_v25 }
  0xe2   : > { %1111 = vmatmul.mubr.msk.f32.gmra.mxu0 %vm672_vm0, %v647_v21  ;;  %1115 = vmatmul.mubr.msk.f32.gmra.mxu1 %vm672_vm0, %v647_v21 }
 0x196   : > { %v751_v26 = vpop.f32.mrf.mxu0  ;;  %v840_v27 = vpop.f32.mrf.mxu1 }
 0x197   : > { %v752_v19 = vadd.f32 %v751_v26, %v655_v44  ;;  %v841_v28 = vadd.f32 %v840_v27, %v655_v44 }
 0x198   : > { %v753_v30 = vpop.f32.mrf.mxu0  ;;  %v842_v31 = vpop.f32.mrf.mxu1 }
 0x199   : > { %v754_v35 = vadd.f32 %v753_v30, %v655_v44  ;;  %v843_v25 = vadd.f32 %v842_v31, %v655_v44  ;;  %v863_v41 = vmax.f32 %v752_v19, 0.0  ;;  %v865_v42 = vmax.f32 %v841_v28, 0.0  ;;  %v901_v28 = vpop.permute.xlu1 %900 }
 0x19a   : > { %v757_v37 = vpop.f32.mrf.mxu0  ;;  %v846_v38 = vpop.f32.mrf.mxu1 }
 0x19b   : > { %v758_v22 = vadd.f32 %v757_v37, %v660_v23  ;;  %v847_v14 = vadd.f32 %v846_v38, %v660_v23  ;;  %v864_v47 = vmax.f32 %v754_v35, 0.0  ;;  %v866_v48 = vmax.f32 %v843_v25, 0.0 }
 0x19c   : > { %v759_v45 = vpop.f32.mrf.mxu0  ;;  %v848_v54 = vpop.f32.mrf.mxu1  ;;  %v903_v57 = vmul.f32 %v886_v40, %v863_v41  ;;  %v905_v0 = vmul.f32 %v886_v40, %v865_v42 }
 0x19d   : > { %v760_v36 = vadd.f32 %v759_v45, %v660_v23  ;;  %v849_v46 = vadd.f32 %v848_v54, %v660_v23  ;;  %v867_v50 = vmax.f32 %v758_v22, 0.0  ;;  %v869_v60 = vmax.f32 %v847_v14, 0.0 }
 0x19e   : > { %v763_v61 = vpop.f32.mrf.mxu0  ;;  %v852_v51 = vpop.f32.mrf.mxu1  ;;  %v904_v5 = vmul.f32 %v886_v40, %v864_v47  ;;  %v906_v3 = vmul.f32 %v886_v40, %v866_v48 }
 0x19f   : > { %v868_v52 = vmax.f32 %v760_v36, 0.0  ;;  %v870_v63 = vmax.f32 %v849_v46, 0.0  ;;  %v764_v53 = vadd.f32 %v763_v61, %v665_v24  ;;  %v853_v59 = vadd.f32 %v852_v51, %v665_v24 }
 0x1a0   : > { %v765_v55 = vpop.f32.mrf.mxu0  ;;  %v854_v43 = vpop.f32.mrf.mxu1  ;;  %v907_v1 = vmul.f32 %v891_v62, %v867_v50  ;;  %v909_v2 = vmul.f32 %v891_v62, %v869_v60 }
 0x1a1   : > { %v871_v4 = vmax.f32 %v764_v53, 0.0  ;;  %v873_v6 = vmax.f32 %v853_v59, 0.0  ;;  %v766_v7 = vadd.f32 %v765_v55, %v665_v24  ;;  %v855_v58 = vadd.f32 %v854_v43, %v665_v24  ;;  %v959_v43 = vpop.permute.xlu0 %958 }
 0x1a2   : > { %v769_v8 = vpop.f32.mrf.mxu0  ;;  %v858_v33 = vpop.f32.mrf.mxu1  ;;  %v908_v49 = vmul.f32 %v891_v62, %v868_v52  ;;  %v910_v9 = vmul.f32 %v891_v62, %v870_v63  ;;  %v919_v17 = vadd.f32 %v907_v1, %v903_v57  ;;  %v937_v21 = vadd.f32 %v909_v2, %v905_v0 }
 0x1a3   : > { %v911_v10 = vmul.f32 %v896_v56, %v871_v4  ;;  %v913_v11 = vmul.f32 %v896_v56, %v873_v6  ;;  %v872_v12 = vmax.f32 %v766_v7, 0.0  ;;  %v874_v13 = vmax.f32 %v855_v58, 0.0 }
 0x1a4   : > { %v770_v15 = vadd.f32 %v769_v8, %v670_v34  ;;  %v859_v16 = vadd.f32 %v858_v33, %v670_v34  ;;  %v771_v18 = vpop.f32.mrf.mxu0  ;;  %v860_v20 = vpop.f32.mrf.mxu1  ;;  %v928_v30 = vadd.f32 %v908_v49, %v904_v5  ;;  %v946_v31 = vadd.f32 %v910_v9, %v906_v3 }
 0x1a5   : > { %v772_v44 = vadd.f32 %v771_v18, %v670_v34  ;;  %v861_v23 = vadd.f32 %v860_v20, %v670_v34  ;;  %v912_v26 = vmul.f32 %v896_v56, %v872_v12  ;;  %v914_v27 = vmul.f32 %v896_v56, %v874_v13 }
 0x1a6   : > { %v875_v19 = vmax.f32 %v770_v15, 0.0  ;;  %v877_v24 = vmax.f32 %v859_v16, 0.0  ;;  %v920_v37 = vadd.f32 %v919_v17, %v911_v10  ;;  %v938_v38 = vadd.f32 %v937_v21, %v913_v11 }
 0x1a7   : > { %v876_v35 = vmax.f32 %v772_v44, 0.0  ;;  %v878_v25 = vmax.f32 %v861_v23, 0.0  ;;  %v929_v42 = vadd.f32 %v928_v30, %v912_v26  ;;  %v947_v22 = vadd.f32 %v946_v31, %v914_v27 }
 0x1a8   : > { %v915_v40 = vmul.f32 %v901_v28, %v875_v19  ;;  %v917_v41 = vmul.f32 %v901_v28, %v877_v24  ;;  %v964_v3 = vrot.slane %v959_v43, %v1442_v39  ;;  %v1261_v27 = vmov 1966171168  }
 0x1a9   : > { %v916_v14 = vmul.f32 %v901_v28, %v876_v35  ;;  %v918_v45 = vmul.f32 %v901_v28, %v878_v25  ;;  %v1000_v19 = vunpack.c.l.s4 %v1261_v27 }
 0x1aa   : > { %v921_v54 = vadd.f32 %v920_v37, %v915_v40  ;;  %v939_v36 = vadd.f32 %v938_v38, %v917_v41 }
 0x1ab   : > { %v930_v34 = vadd.f32 %v929_v42, %v916_v14  ;;  %v948_v46 = vadd.f32 %v947_v22, %v918_v45  ;;  %v1001_v24 = vunpack.c.0.s8 %v1000_v19 }
 0x1ac   : > { %v922_v47 = vrot.slane %v921_v54, 4  ;;  %v940_v48 = vrot.slane %v939_v36, 4 }
 0x1ad   : > { %v931_v50 = vrot.slane %v930_v34, 4  ;;  %v949_v60 = vrot.slane %v948_v46, 4  ;;  %v1004_v31 = vsub.s32 %v1001_v24, %v1430_v32 }
 0x1ae   : > { %v923_v61 = vadd.f32 %v922_v47, %v921_v54  ;;  %v941_v51 = vadd.f32 %v940_v48, %v939_v36 }
 0x1af   : > { %v932_v62 = vadd.f32 %v931_v50, %v930_v34  ;;  %v950_v52 = vadd.f32 %v949_v60, %v948_v46 }
 0x1b0   : > { %v924_v63 = vrot.slane %v923_v61, 2  ;;  %v942_v53 = vrot.slane %v941_v51, 2 }
 0x1b1   : > { %v933_v59 = vrot.slane %v932_v62, 2  ;;  %v951_v57 = vrot.slane %v950_v52, 2 }
 0x1b2   : > { %v925_v0 = vadd.f32 %v924_v63, %v923_v61  ;;  %v943_v55 = vadd.f32 %v942_v53, %v941_v51 }
 0x1b3   : > { %v934_v56 = vadd.f32 %v933_v59, %v932_v62  ;;  %v952_v1 = vadd.f32 %v951_v57, %v950_v52 }
 0x1b4   : > { %v926_v2 = vrot.slane %v925_v0, 1  ;;  %v944_v4 = vrot.slane %v943_v55, 1 }
 0x1b5   : > { %v935_v6 = vrot.slane %v934_v56, 1  ;;  %v953_v5 = vrot.slane %v952_v1, 1 }
 0x1b6   : > { %v927_v7 = vadd.f32 %v926_v2, %v925_v0  ;;  %v945_v58 = vadd.f32 %v944_v4, %v943_v55 }
 0x1b7   : > { %v936_v8 = vadd.f32 %v935_v6, %v934_v56  ;;  %v954_v33 = vadd.f32 %v953_v5, %v952_v1 }
 0x1b8   : > { %v965_v49 = vadd.f32 %v964_v3, %v927_v7  ;;  %v967_v9 = vadd.f32 %v964_v3, %v945_v58 }
 0x1b9   : > { %v966_v10 = vadd.f32 %v964_v3, %v936_v8  ;;  %v968_v11 = vadd.f32 %v964_v3, %v954_v33 }
 0x1ba   : > { %v1116_v12 = vmul.f32 -1.442695, %v965_v49  ;;  %v1118_v13 = vmul.f32 -1.442695, %v967_v9 }
 0x1bb   : > { %v1117_v15 = vmul.f32 -1.442695, %v966_v10  ;;  %v1119_v16 = vmul.f32 -1.442695, %v968_v11 }
 0x1bc   : > { %1180 = vpow2.f32 %v1116_v12 }
 0x1bd   : > { %1182 = vpow2.f32 %v1118_v13 }
 0x1be   : > { %1184 = vpow2.f32 %v1117_v15 }
 0x1bf   : > { %1186 = vpow2.f32 %v1119_v16 }
 0x1c9   : > { %v1181_v18 = vpop.eup %1180 }
 0x1ca   : > { %v1183_v20 = vpop.eup %1182  ;;  %v981_v39 = vadd.f32 1.0, %v1181_v18 }
 0x1cb   : > { %v1185_v17 = vpop.eup %1184  ;;  %v983_v21 = vadd.f32 1.0, %v1183_v20 }
 0x1cc   : > { %v1187_v44 = vpop.eup %1186  ;;  %1188 = vrcp.f32 %v981_v39  ;;  %v982_v23 = vadd.f32 1.0, %v1185_v17 }
 0x1cd   : > { %1190 = vrcp.f32 %v983_v21  ;;  %v984_v26 = vadd.f32 1.0, %v1187_v44 }
 0x1ce   : > { %1192 = vrcp.f32 %v982_v23 }
 0x1cf   : > { %1194 = vrcp.f32 %v984_v26 }
 0x1d9   : > { %v1189_v28 = vpop.eup %1188 }
 0x1da   : > { %v1191_v30 = vpop.eup %1190 }
 0x1db   : > { %v1193_v35 = vpop.eup %1192 }
 0x1dc   : > { %v1195_v25 = vpop.eup %1194  ;;  %v997_v37 = vcombine.low %v1189_v28, %v1193_v35 }
 0x1dd   : > { %v998_v38 = vcombine.low %v1191_v30, %v1195_v25 }
 0x1de   : > { %v1005_v40 = vrot.slane %v997_v37, %v1004_v31 }
 0x1df   : > { %v1012_v41 = vrot.slane %v998_v38, %v1004_v31 }
 0x1e1   : > { %v1013_v42 = vcombine.low %v1005_v40, %v1012_v41 }
 0x1e3   : > { %v1020_v22 = vrot.slane %v1013_v42, %v1004_v31 }
 0x1e5   : > { %1026 = vst.msk [vmem:[%s274_s18] sm:$0xf] %vm1024_vm1, %v1020_v22 }
 0x1e6   : > { %1209 = shalt.err (!%p1206_p3)
}
 0x1e7   : > { %s1210_s9 = scalar_lea.hbm %s1040_s22, 64  ;;  %s1214_s15 = scalar_lea.hbm %s1630_s7, 128 }
 0x1e8   : > { %p1211_p4 = scmp.ne.s32.totalorder %s1040_s22, %s1210_s9  ;;  %p1215_p9 = scmp.lt.s32.totalorder %s1040_s22, %s1630_s7 }
 0x1e9   : > { %p1216_p10 = scmp.lt.s32.totalorder %s1214_s15, %s1210_s9 }
 0x1ea   : > { %p1212_p7 = pnand %p1211_p4, %p1344_p5 }
 0x1eb   : > { %p1217_p11 = por %p1216_p10, %p1215_p9 }
 0x1ec   : > { %p1213_p8 = pneg %p1212_p7 }
 0x1ee   : > { %p1218_p12 = pnand %p1217_p11, %p1213_p8 }
 0x1f0   : > { %1221 = shalt.err (!%p1218_p12)
}
 0x1f1   : > { %1126 = dma.vmem_to_hbm [thread:$0]  (%p1344_p5), %s1043_s19, 64, %s1040_s22, %s1028_s23  }
 0x1f2 PF: > { %p1132_p13 = scmp.ge.s32.totalorder %s1256_s29, 2  ;;  %s1054_s18 = sand.u32 1, %s1244_s26  }
 0x1f3   : > { %s1055_s20 = scalar_lea.sflag [#allocation4], %s1054_s18 }
 0x1f4   : > { %p1129_p0 = pnand %p1132_p13, %p1348_p6 }
 0x1f6   : > { %p1130_p1 = pneg %p1129_p0 }
 0x1f8   : > { %1239 = dma.done.wait (%p1130_p1), %s1055_s20, 64  }
 0x1f9   : > { %1241 = vsyncadd (%p1130_p1), %s1055_s20, 4294967232  ;;  %p19_p2 = scmp.ge.s32.totalorder %s1331_s8, 4   ;;  %s1633_s26 = smov %s1248_s27 }
 0x1fa   : > { %s1634_s27 = smov %s1252_s28  ;;  %s1635_s28 = smov %s1342_s11 }
 0x1fb   : > { %s1636_s29 = smov %s1331_s8  ;;  %21 = sbr.rel (!%p19_p2) target bundleno = 6 (0x6), region = 83 }
 0x200   :  { %1060 = vsyncpa [#allocation4], 1 }
 0x201   :  { %1062 = vsyncpa [#allocation4 + $0x1], 1 }

</bundles_post_ra>
